<compile_context>
chip_gen: v6e
topology: v6e:2x2x1
jax: 0.10.0
libtpu: 0.0.40
codegen_flags: <defaults>
</compile_context>

<pallas_src>
import jax
import jax.numpy as jnp
from jax.experimental import pallas as pl
from jax.experimental.pallas import tpu as pltpu

D_IN = 32 * 32 * 3          # 3072
H1, H2, D_OUT = 64, 32, 10
LANE = 128                  # lane-dense padded width for the hidden layers
TB_MAX = 1024               # max batch tile (f32 x tile = 12 MiB, 24 MiB double-buffered)


def _round_up(x, m):
    return ((x + m - 1) // m) * m


def _cdiv(a, b):
    return (a + b - 1) // b


def _mlp_kernel(x_ref, w1_ref, b1_ref, w2_ref, b2_ref, w3_ref, b3_ref, o_ref):
    # Layer 1: cast the streamed f32 tile to bf16 in VMEM (hidden under the x DMA),
    # then (TB, 3072) bf16 @ (3072, 128) bf16 -> f32 accumulation on the MXU.
    x = x_ref[...].astype(jnp.bfloat16)
    h1 = jnp.dot(x, w1_ref[...], preferred_element_type=jnp.float32)
    h1 = jnp.maximum(h1 + b1_ref[...], 0.0)            # f32 bias + ReLU (VPU)
    # Layer 2: (TB, 128) bf16 @ (128, 128) bf16 (padded cols stay exactly zero).
    h2 = jnp.dot(h1.astype(jnp.bfloat16), w2_ref[...],
                 preferred_element_type=jnp.float32)
    h2 = jnp.maximum(h2 + b2_ref[...], 0.0)
    # Layer 3: (TB, 128) bf16 @ (128, 10) bf16 -> (TB, 10) f32; store is lane-masked
    # but narrow, so writeback bytes are minimal.
    out = jnp.dot(h2.astype(jnp.bfloat16), w3_ref[...],
                  preferred_element_type=jnp.float32) + b3_ref[...]
    o_ref[...] = out.astype(o_ref.dtype)


def _mlp_forward(x_nchw, params):
    """x_nchw: (B, 3, 32, 32) float32. Returns (B, 10) float32."""
    w1, b1, w2, b2, w3, b3 = params
    B = x_nchw.shape[0]

    # nn.Flatten(): row-major (C, H, W) -> 3072; fused under the same jit.
    x = x_nchw.reshape(B, D_IN).astype(jnp.float32)

    # Padding-aware tile choice:
    #   * at least 2 (even) grid steps when B > 16 so v7x's second TC gets work,
    #   * TB <= TB_MAX, multiple of 16, batch over-padding bounded to ~16*n_tiles rows.
    B16 = _round_up(max(B, 16), 16)
    n_tiles = max(_cdiv(B16, TB_MAX), 2 if B16 > 16 else 1)
    if n_tiles > 1 and n_tiles % 2 == 1:
        n_tiles += 1                      # even step count for 2-TC megacore balance
    TB = _round_up(_cdiv(B16, n_tiles), 16)
    B_pad = TB * n_tiles
    if B_pad != B:
        x = jnp.pad(x, ((0, B_pad - B), (0, 0)))

    # Weights: layers 1/2 padded to the 128-lane width (zero padding keeps results
    # exact), stored bf16; layer 3 keeps its true 10-wide output. Biases stay f32.
    w1p = jnp.pad(w1, ((0, 0), (0, LANE - H1))).astype(jnp.bfloat16)        # (3072, 128)
    b1p = jnp.pad(b1, ((0, 0), (0, LANE - H1)))                             # (1, 128)
    w2p = jnp.pad(w2, ((0, LANE - H1), (0, LANE - H2))).astype(jnp.bfloat16)  # (128, 128)
    b2p = jnp.pad(b2, ((0, 0), (0, LANE - H2)))                             # (1, 128)
    w3p = jnp.pad(w3, ((0, LANE - H2), (0, 0))).astype(jnp.bfloat16)        # (128, 10)
    b3p = b3                                                                # (1, 10)

    grid = (n_tiles,)
    const = lambda i: (0, 0)   # weights/biases: one block, resident across the grid

    flops = 2 * B_pad * (D_IN * LANE + LANE * LANE + LANE * D_OUT)
    bytes_accessed = (
        B_pad * D_IN * 4                                   # f32 x stream (read once)
        + (w1p.size + w2p.size + w3p.size) * 2             # bf16 weights (loaded once)
        + (b1p.size + b2p.size + b3p.size) * 4             # f32 biases
        + B_pad * D_OUT * 4                                # narrow f32 output
    )

    out = pl.pallas_call(
        _mlp_kernel,
        out_shape=jax.ShapeDtypeStruct((B_pad, D_OUT), jnp.float32),
        grid_spec=pltpu.PrefetchScalarGridSpec(
            num_scalar_prefetch=0,
            grid=grid,
            in_specs=[
                pl.BlockSpec((TB, D_IN), lambda i: (i, 0)),   # x: streamed per tile
                pl.BlockSpec((D_IN, LANE), const),            # W1 (bf16, resident)
                pl.BlockSpec((1, LANE), const),               # b1
                pl.BlockSpec((LANE, LANE), const),            # W2 (bf16)
                pl.BlockSpec((1, LANE), const),               # b2
                pl.BlockSpec((LANE, D_OUT), const),           # W3 (bf16, 10-wide)
                pl.BlockSpec((1, D_OUT), const),              # b3
            ],
            out_specs=pl.BlockSpec((TB, D_OUT), lambda i: (i, 0)),
        ),
        compiler_params=pltpu.CompilerParams(
            dimension_semantics=("parallel",),        # shard batch tiles across TCs
            vmem_limit_bytes=48 * 1024 * 1024,        # TB=1024 f32 x double-buffered fits
        ),
        cost_estimate=pl.CostEstimate(
            flops=flops, transcendentals=0, bytes_accessed=bytes_accessed),
    )(x, w1p, b1p, w2p, b2p, w3p, b3p)

    # Drop padded batch rows only (output is already 10 lanes wide).
    return out[:B]


mlp_forward = jax.jit(_mlp_forward)


def init_params(key):
    """Deterministic synthetic weights matching nn.Linear's shapes.

    PyTorch stores weights as (out, in); we store the transpose (in, out) so the
    kernel computes y = x @ W + b. Biases are (1, out) rows (broadcast over batch).
    """
    k1, k2, k3, k4, k5, k6 = jax.random.split(key, 6)

    def lin(kw, kb, fan_in, fan_out):
        bound = 1.0 / jnp.sqrt(fan_in)
        w = jax.random.uniform(kw, (fan_in, fan_out), jnp.float32, -bound, bound)
        b = jax.random.uniform(kb, (1, fan_out), jnp.float32, -bound, bound)
        return w, b

    w1, b1 = lin(k1, k2, D_IN, H1)
    w2, b2 = lin(k3, k4, H1, H2)
    w3, b3 = lin(k5, k6, H2, D_OUT)
    return (w1, b1, w2, b2, w3, b3)


def _reference(x_nchw, params):
    """Plain-JAX reference mirroring the kernel's bf16-operand / f32-accum numerics."""
    w1, b1, w2, b2, w3, b3 = params
    x = x_nchw.reshape(x_nchw.shape[0], -1)
    h1 = jnp.dot(x.astype(jnp.bfloat16), w1.astype(jnp.bfloat16),
                 preferred_element_type=jnp.float32)
    h1 = jnp.maximum(h1 + b1, 0.0)
    h2 = jnp.dot(h1.astype(jnp.bfloat16), w2.astype(jnp.bfloat16),
                 preferred_element_type=jnp.float32)
    h2 = jnp.maximum(h2 + b2, 0.0)
    return jnp.dot(h2.astype(jnp.bfloat16), w3.astype(jnp.bfloat16),
                   preferred_element_type=jnp.float32) + b3


if __name__ == "__main__":
    key = jax.random.PRNGKey(0)
    kx, kp = jax.random.split(key)

    # Small deterministic input: batch=2, CIFAR-like (3, 32, 32) as implied by the
    # 32*32*3 input dimension of the first Linear.
    x = jax.random.normal(kx, (2, 3, 32, 32), dtype=jnp.float32)
    params = init_params(kp)

    y = mlp_forward(x, params)
    y = jax.block_until_ready(y)

    y_ref = _reference(x, params)
    assert y.shape == (2, 10), y.shape
    max_err = float(jnp.max(jnp.abs(y - y_ref)))
    assert jnp.allclose(y, y_ref, atol=1e-2, rtol=1e-2), ("mismatch vs reference", max_err)

    print("KERNEL_OK")
</pallas_src>

<mosaic_0001>
module attributes {stable_mosaic.version = 11 : i64} {
  func.func @_mlp_kernel(%arg0: i32, %arg1: memref<16x3072xf32, #tpu.memory_space<vmem>>, %arg2: memref<3072x128xbf16, #tpu.memory_space<vmem>>, %arg3: memref<1x128xf32, #tpu.memory_space<vmem>>, %arg4: memref<128x128xbf16, #tpu.memory_space<vmem>>, %arg5: memref<1x128xf32, #tpu.memory_space<vmem>>, %arg6: memref<128x10xbf16, #tpu.memory_space<vmem>>, %arg7: memref<1x10xf32, #tpu.memory_space<vmem>>, %arg8: memref<16x10xf32, #tpu.memory_space<vmem>>) attributes {dimension_semantics = [#tpu.dimension_semantics<parallel>], iteration_bounds = array<i64: 1>, scalar_prefetch = 0 : i64, scratch_operands = 0 : i64, tpu.core_type = #tpu.core_type<tc>, window_params = [{transform_indices = @transform_0, window_bounds = array<i64: 16, 3072>}, {pipeline_mode = #tpu.pipeline_mode<synchronous>, transform_indices = @transform_1, window_bounds = array<i64: 3072, 128>}, {pipeline_mode = #tpu.pipeline_mode<synchronous>, transform_indices = @transform_2, window_bounds = array<i64: 1, 128>}, {pipeline_mode = #tpu.pipeline_mode<synchronous>, transform_indices = @transform_3, window_bounds = array<i64: 128, 128>}, {pipeline_mode = #tpu.pipeline_mode<synchronous>, transform_indices = @transform_4, window_bounds = array<i64: 1, 128>}, {pipeline_mode = #tpu.pipeline_mode<synchronous>, transform_indices = @transform_5, window_bounds = array<i64: 128, 10>}, {pipeline_mode = #tpu.pipeline_mode<synchronous>, transform_indices = @transform_6, window_bounds = array<i64: 1, 10>}, {transform_indices = @transform_7, window_bounds = array<i64: 16, 10>}]} {
    %c0 = arith.constant 0 : index
    %c0_0 = arith.constant 0 : index
    %0 = vector.load %arg1[%c0, %c0_0] : memref<16x3072xf32, #tpu.memory_space<vmem>>, vector<16x3072xf32>
    %1 = arith.truncf %0 : vector<16x3072xf32> to vector<16x3072xbf16>
    %c0_1 = arith.constant 0 : index
    %c0_2 = arith.constant 0 : index
    %2 = vector.load %arg2[%c0_1, %c0_2] : memref<3072x128xbf16, #tpu.memory_space<vmem>>, vector<3072x128xbf16>
    %cst = arith.constant dense<0.000000e+00> : vector<16x128xf32>
    %3 = tpu.matmul %1, %2, %cst {dimension_numbers = #tpu.dot_dimension_numbers<[1], [0], [0], [1], [0, 0, 1, 1], [], []>} : vector<16x3072xbf16>, vector<3072x128xbf16>, vector<16x128xf32> -> vector<16x128xf32>
    %c0_3 = arith.constant 0 : index
    %c0_4 = arith.constant 0 : index
    %4 = vector.load %arg3[%c0_3, %c0_4] : memref<1x128xf32, #tpu.memory_space<vmem>>, vector<1x128xf32>
    %5 = vector.broadcast %4 : vector<1x128xf32> to vector<16x128xf32>
    %6 = arith.addf %3, %5 : vector<16x128xf32>
    %cst_5 = arith.constant 0.000000e+00 : f32
    %7 = vector.broadcast %cst_5 : f32 to vector<16x128xf32>
    %8 = arith.maximumf %6, %7 : vector<16x128xf32>
    %9 = arith.truncf %8 : vector<16x128xf32> to vector<16x128xbf16>
    %c0_6 = arith.constant 0 : index
    %c0_7 = arith.constant 0 : index
    %10 = vector.load %arg4[%c0_6, %c0_7] : memref<128x128xbf16, #tpu.memory_space<vmem>>, vector<128x128xbf16>
    %cst_8 = arith.constant dense<0.000000e+00> : vector<16x128xf32>
    %11 = tpu.matmul %9, %10, %cst_8 {dimension_numbers = #tpu.dot_dimension_numbers<[1], [0], [0], [1], [0, 0, 1, 1], [], []>} : vector<16x128xbf16>, vector<128x128xbf16>, vector<16x128xf32> -> vector<16x128xf32>
    %c0_9 = arith.constant 0 : index
    %c0_10 = arith.constant 0 : index
    %12 = vector.load %arg5[%c0_9, %c0_10] : memref<1x128xf32, #tpu.memory_space<vmem>>, vector<1x128xf32>
    %13 = vector.broadcast %12 : vector<1x128xf32> to vector<16x128xf32>
    %14 = arith.addf %11, %13 : vector<16x128xf32>
    %cst_11 = arith.constant 0.000000e+00 : f32
    %15 = vector.broadcast %cst_11 : f32 to vector<16x128xf32>
    %16 = arith.maximumf %14, %15 : vector<16x128xf32>
    %17 = arith.truncf %16 : vector<16x128xf32> to vector<16x128xbf16>
    %c0_12 = arith.constant 0 : index
    %c0_13 = arith.constant 0 : index
    %18 = vector.load %arg6[%c0_12, %c0_13] : memref<128x10xbf16, #tpu.memory_space<vmem>>, vector<128x10xbf16>
    %cst_14 = arith.constant dense<0.000000e+00> : vector<16x10xf32>
    %19 = tpu.matmul %17, %18, %cst_14 {dimension_numbers = #tpu.dot_dimension_numbers<[1], [0], [0], [1], [0, 0, 1, 1], [], []>} : vector<16x128xbf16>, vector<128x10xbf16>, vector<16x10xf32> -> vector<16x10xf32>
    %c0_15 = arith.constant 0 : index
    %c0_16 = arith.constant 0 : index
    %20 = vector.load %arg7[%c0_15, %c0_16] : memref<1x10xf32, #tpu.memory_space<vmem>>, vector<1x10xf32>
    %21 = vector.broadcast %20 : vector<1x10xf32> to vector<16x10xf32>
    %22 = arith.addf %19, %21 : vector<16x10xf32>
    %c0_17 = arith.constant 0 : index
    %c0_18 = arith.constant 0 : index
    %23 = vector.load %arg8[%c0_17, %c0_18] : memref<16x10xf32, #tpu.memory_space<vmem>>, vector<16x10xf32>
    tpu.vector_store %arg8[%c0_17, %c0_18], %22 {strides = array<i32>} : memref<16x10xf32, #tpu.memory_space<vmem>>, vector<16x10xf32>,
    return
  }
  func.func @transform_0(%arg0: i32) -> (i32, i32) {
    %c0_i32 = arith.constant 0 : i32
    %c0_i32_0 = arith.constant 0 : i32
    return %arg0, %c0_i32 : i32, i32
  }
  func.func @transform_1(%arg0: i32) -> (i32, i32) {
    %c0_i32 = arith.constant 0 : i32
    %c0_i32_0 = arith.constant 0 : i32
    %c0_i32_1 = arith.constant 0 : i32
    return %c0_i32, %c0_i32_0 : i32, i32
  }
  func.func @transform_2(%arg0: i32) -> (i32, i32) {
    %c0_i32 = arith.constant 0 : i32
    %c0_i32_0 = arith.constant 0 : i32
    %c0_i32_1 = arith.constant 0 : i32
    return %c0_i32, %c0_i32_0 : i32, i32
  }
  func.func @transform_3(%arg0: i32) -> (i32, i32) {
    %c0_i32 = arith.constant 0 : i32
    %c0_i32_0 = arith.constant 0 : i32
    %c0_i32_1 = arith.constant 0 : i32
    return %c0_i32, %c0_i32_0 : i32, i32
  }
  func.func @transform_4(%arg0: i32) -> (i32, i32) {
    %c0_i32 = arith.constant 0 : i32
    %c0_i32_0 = arith.constant 0 : i32
    %c0_i32_1 = arith.constant 0 : i32
    return %c0_i32, %c0_i32_0 : i32, i32
  }
  func.func @transform_5(%arg0: i32) -> (i32, i32) {
    %c0_i32 = arith.constant 0 : i32
    %c0_i32_0 = arith.constant 0 : i32
    %c0_i32_1 = arith.constant 0 : i32
    return %c0_i32, %c0_i32_0 : i32, i32
  }
  func.func @transform_6(%arg0: i32) -> (i32, i32) {
    %c0_i32 = arith.constant 0 : i32
    %c0_i32_0 = arith.constant 0 : i32
    %c0_i32_1 = arith.constant 0 : i32
    return %c0_i32, %c0_i32_0 : i32, i32
  }
  func.func @transform_7(%arg0: i32) -> (i32, i32) {
    %c0_i32 = arith.constant 0 : i32
    %c0_i32_0 = arith.constant 0 : i32
    return %arg0, %c0_i32 : i32, i32
  }
}

</mosaic_0001>

<bundles_post_ra>
// kernel: _mlp_forward.1
= control target key start
LH: loop header
LB: loop body
LE: loop exit
PB: predicated region body
PF: predicated region fallthrough
CT: control target
= control target key end

     0   :  { %vm3115_vm0 = vmmov 0   ;;  %vm2364_vm1 = vcmask 80896   ;;  %s3957_s1 = inlined_call_operand.vmem [shape: bf16[3072,128], index: 1, kind: input, shape index: {}]   ;;  %s3958_s0 = inlined_call_operand.vmem [shape: f32[16,3072], index: 0, kind: input, shape index: {}]   ;;  %s3959_s3 = inlined_call_operand.vmem [shape: bf16[128,128], index: 3, kind: input, shape index: {}]   ;;  %s3960_s5 = inlined_call_operand.vmem [shape: bf16[128,10], index: 5, kind: input, shape index: {}]   ;;  %s3961_s2 = inlined_call_operand.vmem [shape: f32[1,128], index: 2, kind: input, shape index: {}]   ;;  %s3962_s4 = inlined_call_operand.vmem [shape: f32[1,128], index: 4, kind: input, shape index: {}]   ;;  %s3963_s6 = inlined_call_operand.vmem [shape: f32[1,10], index: 6, kind: input, shape index: {}]   ;;  %s3964_s7 = inlined_call_operand.vmem [shape: f32[16,10], index: 7, kind: output, shape index: {}]  }
   0x1   :  { %v2906_v0 = vld [vmem:[%s3957_s1 + $0x78] sm:$0xff]   ;;  %v2910_v4 = vld [vmem:[%s3957_s1 + $0x70] sm:$0xff]   ;;  %v2914_v8 = vld [vmem:[%s3957_s1 + $0x68] sm:$0xff]  }
   0x2   :  { %v2907_v1 = vld [vmem:[%s3957_s1 + $0xf8] sm:$0xff]   ;;  %2582 = vmatprep.subr.bf16.mxu0 %v2906_v0  ;;  %v2911_v5 = vld [vmem:[%s3957_s1 + $0xf0] sm:$0xff]   ;;  %v2915_v9 = vld [vmem:[%s3957_s1 + $0xe8] sm:$0xff]  }
   0x3   :  { %v2908_v2 = vld [vmem:[%s3957_s1 + $0x38] sm:$0xff]   ;;  %2604 = vmatprep.subr.bf16.mxu1 %v2907_v1  ;;  %v2912_v6 = vld [vmem:[%s3957_s1 + $0x30] sm:$0xff]   ;;  %v2916_v10 = vld [vmem:[%s3957_s1 + $0x28] sm:$0xff]  }
   0x4   :  { %v2909_v3 = vld [vmem:[%s3957_s1 + $0xb8] sm:$0xff]   ;;  %2583 = vmatpush3.bf16.msra.mxu0 %v2908_v2  ;;  %v2913_v7 = vld [vmem:[%s3957_s1 + $0xb0] sm:$0xff]   ;;  %v2917_v11 = vld [vmem:[%s3957_s1 + $0xa8] sm:$0xff]  }
   0x5   :  { %2605 = vmatpush3.bf16.msra.mxu1 %v2909_v3  ;;  %2584 = vmatprep.subr.bf16.mxu0 %v2910_v4  ;;  %v2918_v12 = vld [vmem:[%s3957_s1 + $0x60] sm:$0xff]   ;;  %v2922_v16 = vld [vmem:[%s3957_s1 + $0x58] sm:$0xff]   ;;  %v2926_v20 = vld [vmem:[%s3957_s1 + $0x50] sm:$0xff]  }
   0x6   :  { %2606 = vmatprep.subr.bf16.mxu1 %v2911_v5  ;;  %v2919_v13 = vld [vmem:[%s3957_s1 + $0xe0] sm:$0xff]   ;;  %v2923_v17 = vld [vmem:[%s3957_s1 + $0xd8] sm:$0xff]   ;;  %v2927_v21 = vld [vmem:[%s3957_s1 + $0xd0] sm:$0xff]  }
   0x7   :  { %v2920_v14 = vld [vmem:[%s3957_s1 + $0x20] sm:$0xff]   ;;  %v2924_v18 = vld [vmem:[%s3957_s1 + $0x18] sm:$0xff]   ;;  %v2928_v22 = vld [vmem:[%s3957_s1 + $0x10] sm:$0xff]  }
   0x8   :  { %2585 = vmatpush3.bf16.msra.mxu0 %v2912_v6  ;;  %v2921_v15 = vld [vmem:[%s3957_s1 + $0xa0] sm:$0xff]   ;;  %v2925_v19 = vld [vmem:[%s3957_s1 + $0x98] sm:$0xff]   ;;  %v2929_v23 = vld [vmem:[%s3957_s1 + $0x90] sm:$0xff]  }
   0x9   :  { %2607 = vmatpush3.bf16.msra.mxu1 %v2913_v7  ;;  %2586 = vmatprep.subr.bf16.mxu0 %v2914_v8  ;;  %v2930_v24 = vld [vmem:[%s3957_s1 + $0x48] sm:$0xff]   ;;  %v2934_v28 = vld [vmem:[%s3957_s1 + $0x40] sm:$0xff]   ;;  %v30_v34 = vld [vmem:[%s3958_s0 + $0x18] sm:$0xff] }
   0xa   :  { %2608 = vmatprep.subr.bf16.mxu1 %v2915_v9  ;;  %v2931_v25 = vld [vmem:[%s3957_s1 + $0xc8] sm:$0xff]   ;;  %v2935_v29 = vld [vmem:[%s3957_s1 + $0xc0] sm:$0xff]   ;;  %v54_v36 = vld [vmem:[%s3958_s0 + $0xd8] sm:$0xff] }
   0xb   :  { %v2932_v26 = vld [vmem:[%s3957_s1 + $0x8] sm:$0xff]   ;;  %v2936_v30 = vld [vmem:[%s3957_s1] sm:$0xff]   ;;  %v78_v39 = vpack.c.bf16 %v54_v36, %v30_v34  ;;  %v29_v41 = vld [vmem:[%s3958_s0 + $0x10] sm:$0xff] }
   0xc   :  { %2587 = vmatpush3.bf16.msra.mxu0 %v2916_v10  ;;  %v2933_v27 = vld [vmem:[%s3957_s1 + $0x88] sm:$0xff]   ;;  %v2937_v31 = vld [vmem:[%s3957_s1 + $0x80] sm:$0xff]   ;;  %v53_v42 = vld [vmem:[%s3958_s0 + $0xd0] sm:$0xff] }
   0xd   :  { %2609 = vmatpush3.bf16.msra.mxu1 %v2917_v11  ;;  %2588 = vmatprep.subr.bf16.mxu0 %v2918_v12  ;;  %v28_v32 = vld [vmem:[%s3958_s0 + $0x8] sm:$0xff]  ;;  %v27_v37 = vld [vmem:[%s3958_s0] sm:$0xff]  ;;  %v77_v43 = vpack.c.bf16 %v53_v42, %v29_v41  ;;  %v2938_v44 = vld [vmem:[%s3957_s1 + $0x178] sm:$0xff]  }
   0xe   :  { %2610 = vmatprep.subr.bf16.mxu1 %v2919_v13  ;;  %v52_v33 = vld [vmem:[%s3958_s0 + $0xc8] sm:$0xff]  ;;  %v51_v38 = vld [vmem:[%s3958_s0 + $0xc0] sm:$0xff]  ;;  %1715 = vmatprep.mubr.bf16.mxu1 %v78_v39  ;;  %v2939_v45 = vld [vmem:[%s3957_s1 + $0x1f8] sm:$0xff]  }
   0xf   :  { %v76_v35 = vpack.c.bf16 %v52_v33, %v28_v32  ;;  %v75_v40 = vpack.c.bf16 %v51_v38, %v27_v37  ;;  %v2940_v46 = vld [vmem:[%s3957_s1 + $0x138] sm:$0xff]   ;;  %v2942_v48 = vld [vmem:[%s3957_s1 + $0x170] sm:$0xff]   ;;  %v2946_v52 = vld [vmem:[%s3957_s1 + $0x168] sm:$0xff]  }
  0x10   :  { %2589 = vmatpush3.bf16.msra.mxu0 %v2920_v14  ;;  %v2941_v47 = vld [vmem:[%s3957_s1 + $0x1b8] sm:$0xff]   ;;  %v2943_v49 = vld [vmem:[%s3957_s1 + $0x1f0] sm:$0xff]   ;;  %v2947_v53 = vld [vmem:[%s3957_s1 + $0x1e8] sm:$0xff]  }
  0x11   :  { %2611 = vmatpush3.bf16.msra.mxu1 %v2921_v15  ;;  %2590 = vmatprep.subr.bf16.mxu0 %v2922_v16  ;;  %v2944_v50 = vld [vmem:[%s3957_s1 + $0x130] sm:$0xff]   ;;  %v2948_v54 = vld [vmem:[%s3957_s1 + $0x128] sm:$0xff]   ;;  %v2950_v56 = vld [vmem:[%s3957_s1 + $0x160] sm:$0xff]  }
  0x12   :  { %2612 = vmatprep.subr.bf16.mxu1 %v2923_v17  ;;  %1674 = vmatprep.mubr.bf16.mxu0 %v76_v35  ;;  %v2945_v51 = vld [vmem:[%s3957_s1 + $0x1b0] sm:$0xff]   ;;  %v2949_v55 = vld [vmem:[%s3957_s1 + $0x1a8] sm:$0xff]   ;;  %v2951_v57 = vld [vmem:[%s3957_s1 + $0x1e0] sm:$0xff]  }
  0x13   :  { %v2952_v58 = vld [vmem:[%s3957_s1 + $0x120] sm:$0xff]   ;;  %v2954_v60 = vld [vmem:[%s3957_s1 + $0x158] sm:$0xff]   ;;  %v2958_v0 = vld [vmem:[%s3957_s1 + $0x150] sm:$0xff]  }
  0x14   :  { %2591 = vmatpush3.bf16.msra.mxu0 %v2924_v18  ;;  %v2953_v59 = vld [vmem:[%s3957_s1 + $0x1a0] sm:$0xff]   ;;  %v2955_v61 = vld [vmem:[%s3957_s1 + $0x1d8] sm:$0xff]   ;;  %v2959_v1 = vld [vmem:[%s3957_s1 + $0x1d0] sm:$0xff]  }
  0x15   :  { %2613 = vmatpush3.bf16.msra.mxu1 %v2925_v19  ;;  %2592 = vmatprep.subr.bf16.mxu0 %v2926_v20  ;;  %v2956_v62 = vld [vmem:[%s3957_s1 + $0x118] sm:$0xff]   ;;  %v2960_v2 = vld [vmem:[%s3957_s1 + $0x110] sm:$0xff]   ;;  %v2962_v4 = vld [vmem:[%s3957_s1 + $0x148] sm:$0xff]  }
  0x16   :  { %2614 = vmatprep.subr.bf16.mxu1 %v2927_v21  ;;  %v2957_v63 = vld [vmem:[%s3957_s1 + $0x198] sm:$0xff]   ;;  %v2961_v3 = vld [vmem:[%s3957_s1 + $0x190] sm:$0xff]   ;;  %v2963_v5 = vld [vmem:[%s3957_s1 + $0x1c8] sm:$0xff]  }
  0x17   :  { %v2964_v6 = vld [vmem:[%s3957_s1 + $0x108] sm:$0xff]   ;;  %v2966_v8 = vld [vmem:[%s3957_s1 + $0x140] sm:$0xff]   ;;  %v34_v14 = vld [vmem:[%s3958_s0 + $0x38] sm:$0xff] }
  0x18   :  { %2593 = vmatpush3.bf16.msra.mxu0 %v2928_v22  ;;  %v2965_v7 = vld [vmem:[%s3957_s1 + $0x188] sm:$0xff]   ;;  %v2967_v9 = vld [vmem:[%s3957_s1 + $0x1c0] sm:$0xff]   ;;  %v58_v15 = vld [vmem:[%s3958_s0 + $0xf8] sm:$0xff] }
  0x19   :  { %2615 = vmatpush3.bf16.msra.mxu1 %v2929_v23  ;;  %2594 = vmatprep.subr.bf16.mxu0 %v2930_v24  ;;  %v2968_v10 = vld [vmem:[%s3957_s1 + $0x100] sm:$0xff]   ;;  %v32_v12 = vld [vmem:[%s3958_s0 + $0x28] sm:$0xff]  ;;  %v82_v17 = vpack.c.bf16 %v58_v15, %v34_v14  ;;  %v33_v20 = vld [vmem:[%s3958_s0 + $0x30] sm:$0xff] }
  0x1a   :  { %2616 = vmatprep.subr.bf16.mxu1 %v2931_v25  ;;  %v2969_v11 = vld [vmem:[%s3957_s1 + $0x180] sm:$0xff]   ;;  %v56_v13 = vld [vmem:[%s3958_s0 + $0xe8] sm:$0xff]  ;;  %v57_v22 = vld [vmem:[%s3958_s0 + $0xf0] sm:$0xff] }
  0x1b   :  { %v80_v16 = vpack.c.bf16 %v56_v13, %v32_v12  ;;  %v31_v18 = vld [vmem:[%s3958_s0 + $0x20] sm:$0xff]  ;;  %v81_v23 = vpack.c.bf16 %v57_v22, %v33_v20  ;;  %v2970_v24 = vld [vmem:[%s3957_s1 + $0x278] sm:$0xff]   ;;  %v2978_v32 = vld [vmem:[%s3957_s1 + $0x268] sm:$0xff]  }
  0x1c   :  { %2595 = vmatpush3.bf16.msra.mxu0 %v2932_v26  ;;  %v55_v19 = vld [vmem:[%s3958_s0 + $0xe0] sm:$0xff]  ;;  %v2971_v25 = vld [vmem:[%s3957_s1 + $0x2f8] sm:$0xff]   ;;  %v2979_v33 = vld [vmem:[%s3957_s1 + $0x2e8] sm:$0xff]  }
  0x1d   :  { %2617 = vmatpush3.bf16.msra.mxu1 %v2933_v27  ;;  %2596 = vmatprep.subr.bf16.mxu0 %v2934_v28  ;;  %v79_v21 = vpack.c.bf16 %v55_v19, %v31_v18  ;;  %v2972_v26 = vld [vmem:[%s3957_s1 + $0x238] sm:$0xff]   ;;  %v2974_v28 = vld [vmem:[%s3957_s1 + $0x270] sm:$0xff]   ;;  %v2980_v34 = vld [vmem:[%s3957_s1 + $0x228] sm:$0xff]  }
  0x1e   :  { %2618 = vmatprep.subr.bf16.mxu1 %v2935_v29  ;;  %v2973_v27 = vld [vmem:[%s3957_s1 + $0x2b8] sm:$0xff]   ;;  %v2975_v29 = vld [vmem:[%s3957_s1 + $0x2f0] sm:$0xff]   ;;  %v2981_v35 = vld [vmem:[%s3957_s1 + $0x2a8] sm:$0xff]  }
  0x1f   :  { %v2982_v36 = vld [vmem:[%s3957_s1 + $0x260] sm:$0xff]   ;;  %v2987_v41 = vld [vmem:[%s3957_s1 + $0x2d8] sm:$0xff]   ;;  %v3010_v12 = vld [vmem:[%s3957_s1 + $0x368] sm:$0xff]  }
  0x20   :  { %2597 = vmatpush3.bf16.msra.mxu0 %v2936_v30  ;;  %v2976_v30 = vld [vmem:[%s3957_s1 + $0x230] sm:$0xff]   ;;  %v2983_v37 = vld [vmem:[%s3957_s1 + $0x2e0] sm:$0xff]   ;;  %v2988_v42 = vld [vmem:[%s3957_s1 + $0x218] sm:$0xff]  }
  0x21   :  { %2619 = vmatpush3.bf16.msra.mxu1 %v2937_v31  ;;  %2626 = vmatprep.subr.bf16.mxu0 %v2938_v44  ;;  %v2977_v31 = vld [vmem:[%s3957_s1 + $0x2b0] sm:$0xff]   ;;  %v2984_v38 = vld [vmem:[%s3957_s1 + $0x220] sm:$0xff]   ;;  %v3011_v13 = vld [vmem:[%s3957_s1 + $0x3e8] sm:$0xff]  }
  0x22   :  { %2648 = vmatprep.subr.bf16.mxu1 %v2939_v45  ;;  %v2985_v39 = vld [vmem:[%s3957_s1 + $0x2a0] sm:$0xff]   ;;  %v2990_v44 = vld [vmem:[%s3957_s1 + $0x250] sm:$0xff]   ;;  %v3012_v14 = vld [vmem:[%s3957_s1 + $0x328] sm:$0xff]  }
  0x23   :  { %1675 = vmatmul.mubr.bf16.vlgmr.msra.gmra.mxu0 %v75_v40  ;;  %v2986_v40 = vld [vmem:[%s3957_s1 + $0x258] sm:$0xff]   ;;  %v2991_v45 = vld [vmem:[%s3957_s1 + $0x2d0] sm:$0xff]   ;;  %v3013_v15 = vld [vmem:[%s3957_s1 + $0x3a8] sm:$0xff]  }
  0x24   :  { %1716 = vmatmul.mubr.bf16.vlgmr.msra.gmra.mxu1 %v77_v43  ;;  %2627 = vmatpush3.bf16.msra.mxu0 %v2940_v46  ;;  %v2989_v43 = vld [vmem:[%s3957_s1 + $0x298] sm:$0xff]   ;;  %v2992_v46 = vld [vmem:[%s3957_s1 + $0x210] sm:$0xff]   ;;  %v3016_v18 = vld [vmem:[%s3957_s1 + $0x320] sm:$0xff]  }
  0x25   :  { %2649 = vmatpush3.bf16.msra.mxu1 %v2941_v47  ;;  %2628 = vmatprep.subr.bf16.mxu0 %v2942_v48  ;;  %v2993_v47 = vld [vmem:[%s3957_s1 + $0x290] sm:$0xff]   ;;  %v2994_v48 = vld [vmem:[%s3957_s1 + $0x248] sm:$0xff]   ;;  %v3017_v19 = vld [vmem:[%s3957_s1 + $0x3a0] sm:$0xff]  }
  0x26   :  { %2650 = vmatprep.subr.bf16.mxu1 %v2943_v49  ;;  %1756 = vmatprep.mubr.bf16.mxu0 %v80_v16  ;;  %v2995_v49 = vld [vmem:[%s3957_s1 + $0x2c8] sm:$0xff]   ;;  %v3014_v16 = vld [vmem:[%s3957_s1 + $0x360] sm:$0xff]   ;;  %v3018_v20 = vld [vmem:[%s3957_s1 + $0x358] sm:$0xff]  }
  0x27   :  { %1797 = vmatprep.mubr.bf16.mxu1 %v82_v17  ;;  %v3015_v17 = vld [vmem:[%s3957_s1 + $0x3e0] sm:$0xff]   ;;  %v3020_v22 = vld [vmem:[%s3957_s1 + $0x318] sm:$0xff]  }
  0x28   :  { %2629 = vmatpush3.bf16.msra.mxu0 %v2944_v50  ;;  %v2996_v50 = vld [vmem:[%s3957_s1 + $0x208] sm:$0xff]  }
  0x29   :  { %2651 = vmatpush3.bf16.msra.mxu1 %v2945_v51  ;;  %2630 = vmatprep.subr.bf16.mxu0 %v2946_v52  ;;  %v2997_v51 = vld [vmem:[%s3957_s1 + $0x288] sm:$0xff]   ;;  %v2998_v52 = vld [vmem:[%s3957_s1 + $0x240] sm:$0xff]  }
  0x2a   :  { %2652 = vmatprep.subr.bf16.mxu1 %v2947_v53  ;;  %v2999_v53 = vld [vmem:[%s3957_s1 + $0x2c0] sm:$0xff]  }
  0x2c   :  { %2631 = vmatpush3.bf16.msra.mxu0 %v2948_v54  ;;  %v3000_v54 = vld [vmem:[%s3957_s1 + $0x200] sm:$0xff]  }
  0x2d   :  { %2653 = vmatpush3.bf16.msra.mxu1 %v2949_v55  ;;  %2632 = vmatprep.subr.bf16.mxu0 %v2950_v56  ;;  %v3001_v55 = vld [vmem:[%s3957_s1 + $0x280] sm:$0xff]   ;;  %v36_v56 = vld [vmem:[%s3958_s0 + $0x48] sm:$0xff] }
  0x2e   :  { %2654 = vmatprep.subr.bf16.mxu1 %v2951_v57  ;;  %v60_v57 = vld [vmem:[%s3958_s0 + $0x108] sm:$0xff] }
  0x30   :  { %2633 = vmatpush3.bf16.msra.mxu0 %v2952_v58  ;;  %v84_v58 = vpack.c.bf16 %v60_v57, %v36_v56  ;;  %v3042_v56 = vld [vmem:[%s3957_s1 + $0x468] sm:$0xff]  }
  0x31   :  { %2655 = vmatpush3.bf16.msra.mxu1 %v2953_v59  ;;  %2634 = vmatprep.subr.bf16.mxu0 %v2954_v60  ;;  %v38_v59 = vld [vmem:[%s3958_s0 + $0x58] sm:$0xff]  ;;  %v3043_v57 = vld [vmem:[%s3957_s1 + $0x4e8] sm:$0xff]  }
  0x32   :  { %2656 = vmatprep.subr.bf16.mxu1 %v2955_v61  ;;  %v62_v60 = vld [vmem:[%s3958_s0 + $0x118] sm:$0xff]  ;;  %v35_v61 = vld [vmem:[%s3958_s0 + $0x40] sm:$0xff] }
  0x34   :  { %2635 = vmatpush3.bf16.msra.mxu0 %v2956_v62  ;;  %v86_v62 = vpack.c.bf16 %v62_v60, %v38_v59  ;;  %v3045_v59 = vld [vmem:[%s3957_s1 + $0x4a8] sm:$0xff]   ;;  %v3046_v60 = vld [vmem:[%s3957_s1 + $0x460] sm:$0xff]  }
  0x35   :  { %2657 = vmatpush3.bf16.msra.mxu1 %v2957_v63  ;;  %2636 = vmatprep.subr.bf16.mxu0 %v2958_v0  ;;  %v59_v63 = vld [vmem:[%s3958_s0 + $0x100] sm:$0xff]  ;;  %v37_v0 = vld [vmem:[%s3958_s0 + $0x50] sm:$0xff] }
  0x36   :  { %2658 = vmatprep.subr.bf16.mxu1 %v2959_v1  ;;  %v61_v1 = vld [vmem:[%s3958_s0 + $0x110] sm:$0xff] }
  0x38   :  { %2637 = vmatpush3.bf16.msra.mxu0 %v2960_v2  ;;  %v83_v2 = vpack.c.bf16 %v59_v63, %v35_v61  ;;  %v3047_v61 = vld [vmem:[%s3957_s1 + $0x4e0] sm:$0xff]  }
  0x39   :  { %2659 = vmatpush3.bf16.msra.mxu1 %v2961_v3  ;;  %2638 = vmatprep.subr.bf16.mxu0 %v2962_v4  ;;  %v85_v3 = vpack.c.bf16 %v61_v1, %v37_v0  ;;  %v3002_v4 = vld [vmem:[%s3957_s1 + $0x378] sm:$0xff]   ;;  %v3049_v63 = vld [vmem:[%s3957_s1 + $0x4a0] sm:$0xff]  }
  0x3a   :  { %2660 = vmatprep.subr.bf16.mxu1 %v2963_v5  ;;  %v3003_v5 = vld [vmem:[%s3957_s1 + $0x3f8] sm:$0xff]  }
  0x3b   :  { %v3050_v0 = vld [vmem:[%s3957_s1 + $0x458] sm:$0xff]  }
  0x3c   :  { %2639 = vmatpush3.bf16.msra.mxu0 %v2964_v6  ;;  %v3004_v6 = vld [vmem:[%s3957_s1 + $0x338] sm:$0xff]  }
  0x3d   :  { %2661 = vmatpush3.bf16.msra.mxu1 %v2965_v7  ;;  %2640 = vmatprep.subr.bf16.mxu0 %v2966_v8  ;;  %v3005_v7 = vld [vmem:[%s3957_s1 + $0x3b8] sm:$0xff]   ;;  %v3006_v8 = vld [vmem:[%s3957_s1 + $0x370] sm:$0xff]  }
  0x3e   :  { %2662 = vmatprep.subr.bf16.mxu1 %v2967_v9  ;;  %v3007_v9 = vld [vmem:[%s3957_s1 + $0x3f0] sm:$0xff]   ;;  %v3051_v1 = vld [vmem:[%s3957_s1 + $0x4d8] sm:$0xff]  }
  0x40   :  { %2641 = vmatpush3.bf16.msra.mxu0 %v2968_v10  ;;  %v3008_v10 = vld [vmem:[%s3957_s1 + $0x330] sm:$0xff]  }
  0x41   :  { %2663 = vmatpush3.bf16.msra.mxu1 %v2969_v11  ;;  %2670 = vmatprep.subr.bf16.mxu0 %v2970_v24  ;;  %v3009_v11 = vld [vmem:[%s3957_s1 + $0x3b0] sm:$0xff]  }
  0x42   :  { %2692 = vmatprep.subr.bf16.mxu1 %v2971_v25  ;;  %v3022_v24 = vld [vmem:[%s3957_s1 + $0x350] sm:$0xff]  }
  0x43   :  { %1757 = vmatmul.mubr.bf16.vlgmr.msra.gmra.mxu0 %v79_v21  ;;  %v3019_v21 = vld [vmem:[%s3957_s1 + $0x3d8] sm:$0xff]   ;;  %v3023_v25 = vld [vmem:[%s3957_s1 + $0x3d0] sm:$0xff]  }
  0x44   :  { %1798 = vmatmul.mubr.bf16.vlgmr.msra.gmra.mxu1 %v81_v23  ;;  %2671 = vmatpush3.bf16.msra.mxu0 %v2972_v26  ;;  %v3021_v23 = vld [vmem:[%s3957_s1 + $0x398] sm:$0xff]   ;;  %v3024_v26 = vld [vmem:[%s3957_s1 + $0x310] sm:$0xff]  }
  0x45   :  { %2693 = vmatpush3.bf16.msra.mxu1 %v2973_v27  ;;  %2672 = vmatprep.subr.bf16.mxu0 %v2974_v28  ;;  %v3025_v27 = vld [vmem:[%s3957_s1 + $0x390] sm:$0xff]   ;;  %v3026_v28 = vld [vmem:[%s3957_s1 + $0x348] sm:$0xff]  }
  0x46   :  { %2694 = vmatprep.subr.bf16.mxu1 %v2975_v29  ;;  %1838 = vmatprep.mubr.bf16.mxu0 %v84_v58  ;;  %v3027_v29 = vld [vmem:[%s3957_s1 + $0x3c8] sm:$0xff]  }
  0x47   :  { %1879 = vmatprep.mubr.bf16.mxu1 %v86_v62  ;;  %v3044_v58 = vld [vmem:[%s3957_s1 + $0x428] sm:$0xff]   ;;  %v3048_v62 = vld [vmem:[%s3957_s1 + $0x420] sm:$0xff]  }
  0x48   :  { %2673 = vmatpush3.bf16.msra.mxu0 %v2976_v30  ;;  %v3028_v30 = vld [vmem:[%s3957_s1 + $0x308] sm:$0xff]  }
  0x49   :  { %2695 = vmatpush3.bf16.msra.mxu1 %v2977_v31  ;;  %2674 = vmatprep.subr.bf16.mxu0 %v2978_v32  ;;  %v3029_v31 = vld [vmem:[%s3957_s1 + $0x388] sm:$0xff]   ;;  %v3030_v32 = vld [vmem:[%s3957_s1 + $0x340] sm:$0xff]  }
  0x4a   :  { %2696 = vmatprep.subr.bf16.mxu1 %v2979_v33  ;;  %v3031_v33 = vld [vmem:[%s3957_s1 + $0x3c0] sm:$0xff]  }
  0x4c   :  { %2675 = vmatpush3.bf16.msra.mxu0 %v2980_v34  ;;  %v3032_v34 = vld [vmem:[%s3957_s1 + $0x300] sm:$0xff]  }
  0x4d   :  { %2697 = vmatpush3.bf16.msra.mxu1 %v2981_v35  ;;  %2676 = vmatprep.subr.bf16.mxu0 %v2982_v36  ;;  %v3033_v35 = vld [vmem:[%s3957_s1 + $0x380] sm:$0xff]   ;;  %v40_v36 = vld [vmem:[%s3958_s0 + $0x68] sm:$0xff] }
  0x4e   :  { %2698 = vmatprep.subr.bf16.mxu1 %v2983_v37  ;;  %v64_v37 = vld [vmem:[%s3958_s0 + $0x128] sm:$0xff] }
  0x50   :  { %2677 = vmatpush3.bf16.msra.mxu0 %v2984_v38  ;;  %v42_v38 = vld [vmem:[%s3958_s0 + $0x78] sm:$0xff] }
  0x51   :  { %2699 = vmatpush3.bf16.msra.mxu1 %v2985_v39  ;;  %2678 = vmatprep.subr.bf16.mxu0 %v2986_v40  ;;  %v88_v39 = vpack.c.bf16 %v64_v37, %v40_v36  ;;  %v66_v40 = vld [vmem:[%s3958_s0 + $0x138] sm:$0xff]  ;;  %v3074_v36 = vld [vmem:[%s3957_s1 + $0x568] sm:$0xff]  }
  0x52   :  { %2700 = vmatprep.subr.bf16.mxu1 %v2987_v41  ;;  %v39_v41 = vld [vmem:[%s3958_s0 + $0x60] sm:$0xff]  ;;  %v3075_v37 = vld [vmem:[%s3957_s1 + $0x5e8] sm:$0xff]  }
  0x54   :  { %2679 = vmatpush3.bf16.msra.mxu0 %v2988_v42  ;;  %v63_v42 = vld [vmem:[%s3958_s0 + $0x120] sm:$0xff] }
  0x55   :  { %2701 = vmatpush3.bf16.msra.mxu1 %v2989_v43  ;;  %2680 = vmatprep.subr.bf16.mxu0 %v2990_v44  ;;  %v90_v43 = vpack.c.bf16 %v66_v40, %v42_v38  ;;  %v87_v44 = vpack.c.bf16 %v63_v42, %v39_v41  ;;  %v3076_v38 = vld [vmem:[%s3957_s1 + $0x528] sm:$0xff]   ;;  %v3078_v40 = vld [vmem:[%s3957_s1 + $0x560] sm:$0xff]  }
  0x56   :  { %2702 = vmatprep.subr.bf16.mxu1 %v2991_v45  ;;  %v41_v45 = vld [vmem:[%s3958_s0 + $0x70] sm:$0xff]  ;;  %v3079_v41 = vld [vmem:[%s3957_s1 + $0x5e0] sm:$0xff]  }
  0x57   :  { %v3080_v42 = vld [vmem:[%s3957_s1 + $0x520] sm:$0xff]  }
  0x58   :  { %2681 = vmatpush3.bf16.msra.mxu0 %v2992_v46  ;;  %v65_v46 = vld [vmem:[%s3958_s0 + $0x130] sm:$0xff] }
  0x59   :  { %2703 = vmatpush3.bf16.msra.mxu1 %v2993_v47  ;;  %2682 = vmatprep.subr.bf16.mxu0 %v2994_v48  ;;  %v89_v47 = vpack.c.bf16 %v65_v46, %v41_v45  ;;  %v3034_v48 = vld [vmem:[%s3957_s1 + $0x478] sm:$0xff]  }
  0x5a   :  { %2704 = vmatprep.subr.bf16.mxu1 %v2995_v49  ;;  %v3035_v49 = vld [vmem:[%s3957_s1 + $0x4f8] sm:$0xff]  }
  0x5b   :  { %v3083_v45 = vld [vmem:[%s3957_s1 + $0x5d8] sm:$0xff]  }
  0x5c   :  { %2683 = vmatpush3.bf16.msra.mxu0 %v2996_v50  ;;  %v3036_v50 = vld [vmem:[%s3957_s1 + $0x438] sm:$0xff]  }
  0x5d   :  { %2705 = vmatpush3.bf16.msra.mxu1 %v2997_v51  ;;  %2684 = vmatprep.subr.bf16.mxu0 %v2998_v52  ;;  %v3037_v51 = vld [vmem:[%s3957_s1 + $0x4b8] sm:$0xff]   ;;  %v3038_v52 = vld [vmem:[%s3957_s1 + $0x470] sm:$0xff]  }
  0x5e   :  { %2706 = vmatprep.subr.bf16.mxu1 %v2999_v53  ;;  %v3039_v53 = vld [vmem:[%s3957_s1 + $0x4f0] sm:$0xff]   ;;  %v3084_v46 = vld [vmem:[%s3957_s1 + $0x518] sm:$0xff]  }
  0x60   :  { %2685 = vmatpush3.bf16.msra.mxu0 %v3000_v54  ;;  %v3040_v54 = vld [vmem:[%s3957_s1 + $0x430] sm:$0xff]  }
  0x61   :  { %2707 = vmatpush3.bf16.msra.mxu1 %v3001_v55  ;;  %2714 = vmatprep.subr.bf16.mxu0 %v3002_v4  ;;  %v3041_v55 = vld [vmem:[%s3957_s1 + $0x4b0] sm:$0xff]  }
  0x62   :  { %2736 = vmatprep.subr.bf16.mxu1 %v3003_v5  ;;  %v3054_v4 = vld [vmem:[%s3957_s1 + $0x450] sm:$0xff]  }
  0x63   :  { %1839 = vmatmul.mubr.bf16.vlgmr.msra.gmra.mxu0 %v83_v2  ;;  %v3052_v2 = vld [vmem:[%s3957_s1 + $0x418] sm:$0xff]   ;;  %v3055_v5 = vld [vmem:[%s3957_s1 + $0x4d0] sm:$0xff]  }
  0x64   :  { %1880 = vmatmul.mubr.bf16.vlgmr.msra.gmra.mxu1 %v85_v3  ;;  %2715 = vmatpush3.bf16.msra.mxu0 %v3004_v6  ;;  %v3053_v3 = vld [vmem:[%s3957_s1 + $0x498] sm:$0xff]   ;;  %v3056_v6 = vld [vmem:[%s3957_s1 + $0x410] sm:$0xff]  }
  0x65   :  { %2737 = vmatpush3.bf16.msra.mxu1 %v3005_v7  ;;  %2716 = vmatprep.subr.bf16.mxu0 %v3006_v8  ;;  %v3057_v7 = vld [vmem:[%s3957_s1 + $0x490] sm:$0xff]   ;;  %v3058_v8 = vld [vmem:[%s3957_s1 + $0x448] sm:$0xff]  }
  0x66   :  { %2738 = vmatprep.subr.bf16.mxu1 %v3007_v9  ;;  %1920 = vmatprep.mubr.bf16.mxu0 %v88_v39  ;;  %v3059_v9 = vld [vmem:[%s3957_s1 + $0x4c8] sm:$0xff]  }
  0x67   :  { %1961 = vmatprep.mubr.bf16.mxu1 %v90_v43  ;;  %v3077_v39 = vld [vmem:[%s3957_s1 + $0x5a8] sm:$0xff]   ;;  %v3081_v43 = vld [vmem:[%s3957_s1 + $0x5a0] sm:$0xff]  }
  0x68   :  { %2717 = vmatpush3.bf16.msra.mxu0 %v3008_v10  ;;  %v3060_v10 = vld [vmem:[%s3957_s1 + $0x408] sm:$0xff]  }
  0x69   :  { %2739 = vmatpush3.bf16.msra.mxu1 %v3009_v11  ;;  %2718 = vmatprep.subr.bf16.mxu0 %v3010_v12  ;;  %v3061_v11 = vld [vmem:[%s3957_s1 + $0x488] sm:$0xff]   ;;  %v3062_v12 = vld [vmem:[%s3957_s1 + $0x440] sm:$0xff]  }
  0x6a   :  { %2740 = vmatprep.subr.bf16.mxu1 %v3011_v13  ;;  %v3063_v13 = vld [vmem:[%s3957_s1 + $0x4c0] sm:$0xff]  }
  0x6c   :  { %2719 = vmatpush3.bf16.msra.mxu0 %v3012_v14  ;;  %v3064_v14 = vld [vmem:[%s3957_s1 + $0x400] sm:$0xff]  }
  0x6d   :  { %2741 = vmatpush3.bf16.msra.mxu1 %v3013_v15  ;;  %2720 = vmatprep.subr.bf16.mxu0 %v3014_v16  ;;  %v3065_v15 = vld [vmem:[%s3957_s1 + $0x480] sm:$0xff]   ;;  %v44_v16 = vld [vmem:[%s3958_s0 + $0x88] sm:$0xff] }
  0x6e   :  { %2742 = vmatprep.subr.bf16.mxu1 %v3015_v17  ;;  %v68_v17 = vld [vmem:[%s3958_s0 + $0x148] sm:$0xff] }
  0x70   :  { %2721 = vmatpush3.bf16.msra.mxu0 %v3016_v18  ;;  %v46_v18 = vld [vmem:[%s3958_s0 + $0x98] sm:$0xff] }
  0x71   :  { %2743 = vmatpush3.bf16.msra.mxu1 %v3017_v19  ;;  %2722 = vmatprep.subr.bf16.mxu0 %v3018_v20  ;;  %v70_v19 = vld [vmem:[%s3958_s0 + $0x158] sm:$0xff]  ;;  %v92_v20 = vpack.c.bf16 %v68_v17, %v44_v16  ;;  %v3105_v16 = vld [vmem:[%s3959_s3] sm:$0xff]  }
  0x72   :  { %2744 = vmatprep.subr.bf16.mxu1 %v3019_v21  ;;  %v94_v21 = vpack.c.bf16 %v70_v19, %v46_v18  ;;  %v3106_v17 = vld [vmem:[%s3960_s5 + $0x38] sm:$0xff]   ;;  %v3107_v18 = vld [vmem:[%s3960_s5 + $0x30] sm:$0xff]   ;;  %v3108_v19 = vld [vmem:[%s3960_s5 + $0x28] sm:$0xff]  }
  0x74   :  { %2723 = vmatpush3.bf16.msra.mxu0 %v3020_v22  ;;  %v43_v22 = vld [vmem:[%s3958_s0 + $0x80] sm:$0xff] }
  0x75   :  { %2745 = vmatpush3.bf16.msra.mxu1 %v3021_v23  ;;  %2724 = vmatprep.subr.bf16.mxu0 %v3022_v24  ;;  %v67_v23 = vld [vmem:[%s3958_s0 + $0x140] sm:$0xff]  ;;  %v45_v24 = vld [vmem:[%s3958_s0 + $0x90] sm:$0xff] }
  0x76   :  { %2746 = vmatprep.subr.bf16.mxu1 %v3023_v25  ;;  %v91_v25 = vpack.c.bf16 %v67_v23, %v43_v22 }
  0x78   :  { %2725 = vmatpush3.bf16.msra.mxu0 %v3024_v26  ;;  %v69_v26 = vld [vmem:[%s3958_s0 + $0x150] sm:$0xff] }
  0x79   :  { %2747 = vmatpush3.bf16.msra.mxu1 %v3025_v27  ;;  %2726 = vmatprep.subr.bf16.mxu0 %v3026_v28  ;;  %v93_v27 = vpack.c.bf16 %v69_v26, %v45_v24  ;;  %v3066_v28 = vld [vmem:[%s3957_s1 + $0x578] sm:$0xff]  }
  0x7a   :  { %2748 = vmatprep.subr.bf16.mxu1 %v3027_v29  ;;  %v3067_v29 = vld [vmem:[%s3957_s1 + $0x5f8] sm:$0xff]  }
  0x7c   :  { %2727 = vmatpush3.bf16.msra.mxu0 %v3028_v30  ;;  %v3068_v30 = vld [vmem:[%s3957_s1 + $0x538] sm:$0xff]  }
  0x7d   :  { %2749 = vmatpush3.bf16.msra.mxu1 %v3029_v31  ;;  %2728 = vmatprep.subr.bf16.mxu0 %v3030_v32  ;;  %v3069_v31 = vld [vmem:[%s3957_s1 + $0x5b8] sm:$0xff]   ;;  %v3070_v32 = vld [vmem:[%s3957_s1 + $0x570] sm:$0xff]  }
  0x7e   :  { %2750 = vmatprep.subr.bf16.mxu1 %v3031_v33  ;;  %v3071_v33 = vld [vmem:[%s3957_s1 + $0x5f0] sm:$0xff]  }
  0x80   :  { %2729 = vmatpush3.bf16.msra.mxu0 %v3032_v34  ;;  %v3072_v34 = vld [vmem:[%s3957_s1 + $0x530] sm:$0xff]  }
  0x81   :  { %2751 = vmatpush3.bf16.msra.mxu1 %v3033_v35  ;;  %2758 = vmatprep.subr.bf16.mxu0 %v3034_v48  ;;  %v3073_v35 = vld [vmem:[%s3957_s1 + $0x5b0] sm:$0xff]  }
  0x82   :  { %2780 = vmatprep.subr.bf16.mxu1 %v3035_v49  ;;  %v3086_v48 = vld [vmem:[%s3957_s1 + $0x550] sm:$0xff]  }
  0x83   :  { %1921 = vmatmul.mubr.bf16.vlgmr.msra.gmra.mxu0 %v87_v44  ;;  %v3082_v44 = vld [vmem:[%s3957_s1 + $0x558] sm:$0xff]   ;;  %v3087_v49 = vld [vmem:[%s3957_s1 + $0x5d0] sm:$0xff]  }
  0x84   :  { %1962 = vmatmul.mubr.bf16.vlgmr.msra.gmra.mxu1 %v89_v47  ;;  %2759 = vmatpush3.bf16.msra.mxu0 %v3036_v50  ;;  %v3085_v47 = vld [vmem:[%s3957_s1 + $0x598] sm:$0xff]   ;;  %v3088_v50 = vld [vmem:[%s3957_s1 + $0x510] sm:$0xff]  }
  0x85   :  { %2781 = vmatpush3.bf16.msra.mxu1 %v3037_v51  ;;  %2760 = vmatprep.subr.bf16.mxu0 %v3038_v52  ;;  %v3089_v51 = vld [vmem:[%s3957_s1 + $0x590] sm:$0xff]   ;;  %v3090_v52 = vld [vmem:[%s3957_s1 + $0x548] sm:$0xff]  }
  0x86   :  { %2782 = vmatprep.subr.bf16.mxu1 %v3039_v53  ;;  %2002 = vmatprep.mubr.bf16.mxu0 %v92_v20  ;;  %v3091_v53 = vld [vmem:[%s3957_s1 + $0x5c8] sm:$0xff]   ;;  %v3109_v20 = vld [vmem:[%s3960_s5 + $0x20] sm:$0xff]  }
  0x87   :  { %2043 = vmatprep.mubr.bf16.mxu1 %v94_v21  ;;  %v3110_v21 = vld [vmem:[%s3960_s5 + $0x18] sm:$0xff]  }
  0x88   :  { %2761 = vmatpush3.bf16.msra.mxu0 %v3040_v54  ;;  %v3092_v54 = vld [vmem:[%s3957_s1 + $0x508] sm:$0xff]  }
  0x89   :  { %2783 = vmatpush3.bf16.msra.mxu1 %v3041_v55  ;;  %2762 = vmatprep.subr.bf16.mxu0 %v3042_v56  ;;  %v3093_v55 = vld [vmem:[%s3957_s1 + $0x588] sm:$0xff]   ;;  %v3094_v56 = vld [vmem:[%s3957_s1 + $0x540] sm:$0xff]  }
  0x8a   :  { %2784 = vmatprep.subr.bf16.mxu1 %v3043_v57  ;;  %v3095_v57 = vld [vmem:[%s3957_s1 + $0x5c0] sm:$0xff]  }
  0x8c   :  { %2763 = vmatpush3.bf16.msra.mxu0 %v3044_v58  ;;  %v3096_v58 = vld [vmem:[%s3957_s1 + $0x500] sm:$0xff]  }
  0x8d   :  { %2785 = vmatpush3.bf16.msra.mxu1 %v3045_v59  ;;  %2764 = vmatprep.subr.bf16.mxu0 %v3046_v60  ;;  %v3097_v59 = vld [vmem:[%s3957_s1 + $0x580] sm:$0xff]   ;;  %v48_v60 = vld [vmem:[%s3958_s0 + $0xa8] sm:$0xff] }
  0x8e   :  { %2786 = vmatprep.subr.bf16.mxu1 %v3047_v61  ;;  %v72_v61 = vld [vmem:[%s3958_s0 + $0x168] sm:$0xff] }
  0x90   :  { %2765 = vmatpush3.bf16.msra.mxu0 %v3048_v62  ;;  %v96_v62 = vpack.c.bf16 %v72_v61, %v48_v60 }
  0x91   :  { %2787 = vmatpush3.bf16.msra.mxu1 %v3049_v63  ;;  %2766 = vmatprep.subr.bf16.mxu0 %v3050_v0  ;;  %v50_v63 = vld [vmem:[%s3958_s0 + $0xb8] sm:$0xff] }
  0x92   :  { %2788 = vmatprep.subr.bf16.mxu1 %v3051_v1  ;;  %v74_v0 = vld [vmem:[%s3958_s0 + $0x178] sm:$0xff]  ;;  %v47_v1 = vld [vmem:[%s3958_s0 + $0xa0] sm:$0xff] }
  0x94   :  { %2767 = vmatpush3.bf16.msra.mxu0 %v3052_v2  ;;  %v98_v2 = vpack.c.bf16 %v74_v0, %v50_v63 }
  0x95   :  { %2789 = vmatpush3.bf16.msra.mxu1 %v3053_v3  ;;  %2768 = vmatprep.subr.bf16.mxu0 %v3054_v4  ;;  %v71_v3 = vld [vmem:[%s3958_s0 + $0x160] sm:$0xff]  ;;  %v49_v4 = vld [vmem:[%s3958_s0 + $0xb0] sm:$0xff] }
  0x96   :  { %2790 = vmatprep.subr.bf16.mxu1 %v3055_v5  ;;  %v73_v5 = vld [vmem:[%s3958_s0 + $0x170] sm:$0xff] }
  0x98   :  { %2769 = vmatpush3.bf16.msra.mxu0 %v3056_v6  ;;  %v95_v6 = vpack.c.bf16 %v71_v3, %v47_v1 }
  0x99   :  { %2791 = vmatpush3.bf16.msra.mxu1 %v3057_v7  ;;  %2770 = vmatprep.subr.bf16.mxu0 %v3058_v8  ;;  %v97_v7 = vpack.c.bf16 %v73_v5, %v49_v4  ;;  %v3114_v8 = vmov 0.0  }
  0x9a   :  { %2792 = vmatprep.subr.bf16.mxu1 %v3059_v9  ;;  %v3098_v9 = vld [vmem:[%s3959_s3 + $0x38] sm:$0xff]  }
  0x9c   :  { %2771 = vmatpush3.bf16.msra.mxu0 %v3060_v10  ;;  %v3099_v10 = vld [vmem:[%s3959_s3 + $0x30] sm:$0xff]  }
  0x9d   :  { %2793 = vmatpush3.bf16.msra.mxu1 %v3061_v11  ;;  %2772 = vmatprep.subr.bf16.mxu0 %v3062_v12  ;;  %v3100_v11 = vld [vmem:[%s3959_s3 + $0x28] sm:$0xff]   ;;  %v3101_v12 = vld [vmem:[%s3959_s3 + $0x20] sm:$0xff]  }
  0x9e   :  { %2794 = vmatprep.subr.bf16.mxu1 %v3063_v13  ;;  %v3102_v13 = vld [vmem:[%s3959_s3 + $0x18] sm:$0xff]  }
  0xa0   :  { %2773 = vmatpush3.bf16.msra.mxu0 %v3064_v14  ;;  %v3103_v14 = vld [vmem:[%s3959_s3 + $0x10] sm:$0xff]  }
  0xa1   :  { %2795 = vmatpush3.bf16.msra.mxu1 %v3065_v15  ;;  %2802 = vmatprep.subr.bf16.mxu0 %v3066_v28  ;;  %v3104_v15 = vld [vmem:[%s3959_s3 + $0x8] sm:$0xff]  }
  0xa2   :  { %2824 = vmatprep.subr.bf16.mxu1 %v3067_v29 }
  0xa3   :  { %2003 = vmatmul.mubr.bf16.vlgmr.msra.gmra.mxu0 %v91_v25 }
  0xa4   :  { %2044 = vmatmul.mubr.bf16.vlgmr.msra.gmra.mxu1 %v93_v27  ;;  %2803 = vmatpush3.bf16.msra.mxu0 %v3068_v30 }
  0xa5   :  { %2825 = vmatpush3.bf16.msra.mxu1 %v3069_v31  ;;  %2804 = vmatprep.subr.bf16.mxu0 %v3070_v32 }
  0xa6   :  { %2826 = vmatprep.subr.bf16.mxu1 %v3071_v33  ;;  %2084 = vmatprep.mubr.bf16.mxu0 %v96_v62 }
  0xa7   :  { %2125 = vmatprep.mubr.bf16.mxu1 %v98_v2 }
  0xa8   :  { %2805 = vmatpush3.bf16.msra.mxu0 %v3072_v34 }
  0xa9   :  { %2827 = vmatpush3.bf16.msra.mxu1 %v3073_v35  ;;  %2806 = vmatprep.subr.bf16.mxu0 %v3074_v36 }
  0xaa   :  { %2828 = vmatprep.subr.bf16.mxu1 %v3075_v37 }
  0xac   :  { %2807 = vmatpush3.bf16.msra.mxu0 %v3076_v38 }
  0xad   :  { %2829 = vmatpush3.bf16.msra.mxu1 %v3077_v39  ;;  %2808 = vmatprep.subr.bf16.mxu0 %v3078_v40 }
  0xae   :  { %2830 = vmatprep.subr.bf16.mxu1 %v3079_v41 }
  0xb0   :  { %2809 = vmatpush3.bf16.msra.mxu0 %v3080_v42 }
  0xb1   :  { %2831 = vmatpush3.bf16.msra.mxu1 %v3081_v43  ;;  %2810 = vmatprep.subr.bf16.mxu0 %v3082_v44 }
  0xb2   :  { %2832 = vmatprep.subr.bf16.mxu1 %v3083_v45 }
  0xb4   :  { %2811 = vmatpush3.bf16.msra.mxu0 %v3084_v46 }
  0xb5   :  { %2833 = vmatpush3.bf16.msra.mxu1 %v3085_v47  ;;  %2812 = vmatprep.subr.bf16.mxu0 %v3086_v48  ;;  %v2371_v48 = vld [vmem:[%s3961_s2] ss:$0 sm:$0xff] }
  0xb6   :  { %2834 = vmatprep.subr.bf16.mxu1 %v3087_v49 }
  0xb8   :  { %2813 = vmatpush3.bf16.msra.mxu0 %v3088_v50 }
  0xb9   :  { %2835 = vmatpush3.bf16.msra.mxu1 %v3089_v51  ;;  %2814 = vmatprep.subr.bf16.mxu0 %v3090_v52 }
  0xba   :  { %2836 = vmatprep.subr.bf16.mxu1 %v3091_v53 }
  0xbc   :  { %2815 = vmatpush3.bf16.msra.mxu0 %v3092_v54 }
  0xbd   :  { %2837 = vmatpush3.bf16.msra.mxu1 %v3093_v55  ;;  %2816 = vmatprep.subr.bf16.mxu0 %v3094_v56 }
  0xbe   :  { %2838 = vmatprep.subr.bf16.mxu1 %v3095_v57 }
  0xc0   :  { %2817 = vmatpush3.bf16.msra.mxu0 %v3096_v58 }
  0xc1   :  { %2839 = vmatpush3.bf16.msra.mxu1 %v3097_v59  ;;  %2864 = vmatprep.subr.bf16.mxu0 %v3114_v8 }
  0xc2   :  { %2884 = vmatprep.subr.bf16.mxu1 %v3114_v8 }
  0xc3   :  { %2085 = vmatmul.mubr.bf16.vlgmr.msra.gmra.mxu0 %v95_v6 }
  0xc4   :  { %2126 = vmatmul.mubr.bf16.vlgmr.msra.gmra.mxu1 %v97_v7  ;;  %2865 = vmatpush3.bf16.msra.mxu0 %v3098_v9 }
  0xc5   :  { %2866 = vmatprep.subr.bf16.mxu0 %v3114_v8  ;;  %2880 = vmatprep.mubr.msk.bf16.mxu0 %vm3115_vm0, %v3114_v8 }
  0xc6   :  { %2900 = vmatprep.mubr.msk.bf16.mxu1 %vm3115_vm0, %v3114_v8  ;;  %2885 = vmatpush3.bf16.msra.mxu1 %v3106_v17 }
  0xc7   :  { %2886 = vmatprep.subr.bf16.mxu1 %v3114_v8 }
  0xc8   :  { %2867 = vmatpush3.bf16.msra.mxu0 %v3099_v10 }
  0xc9   :  { %2868 = vmatprep.subr.bf16.mxu0 %v3114_v8 }
  0xca   :  { %2887 = vmatpush3.bf16.msra.mxu1 %v3107_v18 }
  0xcb   :  { %2888 = vmatprep.subr.bf16.mxu1 %v3114_v8 }
  0xcc   :  { %2869 = vmatpush3.bf16.msra.mxu0 %v3100_v11 }
  0xcd   :  { %2870 = vmatprep.subr.bf16.mxu0 %v3114_v8 }
  0xce   :  { %2889 = vmatpush3.bf16.msra.mxu1 %v3108_v19 }
  0xcf   :  { %2890 = vmatprep.subr.bf16.mxu1 %v3114_v8 }
  0xd0   :  { %2871 = vmatpush3.bf16.msra.mxu0 %v3101_v12 }
  0xd1   :  { %2872 = vmatprep.subr.bf16.mxu0 %v3114_v8 }
  0xd2   :  { %2891 = vmatpush3.bf16.msra.mxu1 %v3109_v20 }
  0xd3   :  { %2892 = vmatprep.subr.bf16.mxu1 %v3114_v8 }
  0xd4   :  { %2873 = vmatpush3.bf16.msra.mxu0 %v3102_v13 }
  0xd5   :  { %2874 = vmatprep.subr.bf16.mxu0 %v3114_v8 }
  0xd6   :  { %2893 = vmatpush3.bf16.msra.mxu1 %v3110_v21 }
  0xd7   :  { %2894 = vmatprep.subr.bf16.mxu1 %v3114_v8 }
  0xd8   :  { %2875 = vmatpush3.bf16.msra.mxu0 %v3103_v14 }
  0xd9   :  { %2876 = vmatprep.subr.bf16.mxu0 %v3114_v8 }
  0xdc   :  { %2877 = vmatpush3.bf16.msra.mxu0 %v3104_v15 }
  0xdd   :  { %2878 = vmatprep.subr.bf16.mxu0 %v3114_v8 }
  0xe0   :  { %2879 = vmatpush3.bf16.msra.mxu0 %v3105_v16 }
  0xe3   :  { %v2598_v22 = vpop.f32.mrf.mxu0 }
  0xe4   :  { %v2620_v23 = vpop.f32.mrf.mxu1 }
  0xe5   :  { %v2599_v24 = vpop.f32.mrf.mxu0 }
  0xe6   :  { %v2621_v25 = vpop.f32.mrf.mxu1  ;;  %v2600_v47 = vadd.f32 %v2599_v24, %v2598_v22 }
  0xe7   :  { %v2601_v26 = vpop.f32.mrf.mxu0  ;;  %v2622_v52 = vadd.f32 %v2621_v25, %v2620_v23 }
  0xe8   :  { %v2623_v27 = vpop.f32.mrf.mxu1  ;;  %v1677_v51 = vadd.f32 %v2600_v47, %v2371_v48 }
  0xe9   :  { %v2602_v28 = vpop.f32.mrf.mxu0 }
  0xea   :  { %v2624_v29 = vpop.f32.mrf.mxu1  ;;  %v2603_v53 = vadd.f32 %v2602_v28, %v2601_v26  ;;  %v1718_v57 = vadd.f32 %v2622_v52, %v1677_v51 }
  0xeb   :  { %v2625_v60 = vadd.f32 %v2624_v29, %v2623_v27 }
  0xec   :  { %v1680_v58 = vadd.f32 %v2603_v53, %v2371_v48 }
  0xee   :  { %v1721_v1 = vadd.f32 %v2625_v60, %v1680_v58  ;;  %v3112_v60 = vld [vmem:[%s3960_s5 + $0x8] sm:$0xff]  }
 0x103   :  { %v2642_v30 = vpop.f32.mrf.mxu0 }
 0x104   :  { %v2664_v31 = vpop.f32.mrf.mxu1 }
 0x105   :  { %v2643_v32 = vpop.f32.mrf.mxu0 }
 0x106   :  { %v2665_v33 = vpop.f32.mrf.mxu1  ;;  %v2644_v55 = vadd.f32 %v2643_v32, %v2642_v30 }
 0x107   :  { %v2645_v34 = vpop.f32.mrf.mxu0  ;;  %v2666_v62 = vadd.f32 %v2665_v33, %v2664_v31 }
 0x108   :  { %v2667_v35 = vpop.f32.mrf.mxu1  ;;  %v1759_v61 = vadd.f32 %v2644_v55, %v1718_v57 }
 0x109   :  { %v2646_v36 = vpop.f32.mrf.mxu0 }
 0x10a   :  { %v2668_v37 = vpop.f32.mrf.mxu1  ;;  %v2647_v63 = vadd.f32 %v2646_v36, %v2645_v34  ;;  %v1800_v5 = vadd.f32 %v2666_v62, %v1759_v61  ;;  %v3113_v61 = vld [vmem:[%s3960_s5] sm:$0xff]  }
 0x10b   :  { %v2669_v9 = vadd.f32 %v2668_v37, %v2667_v35  ;;  %v2564_v62 = vld [vmem:[%s3962_s4] ss:$0 sm:$0xff] }
 0x10c   :  { %v1762_v6 = vadd.f32 %v2647_v63, %v1721_v1 }
 0x10e   :  { %v1803_v14 = vadd.f32 %v2669_v9, %v1762_v6 }
 0x123   :  { %v2686_v38 = vpop.f32.mrf.mxu0 }
 0x124   :  { %v2708_v39 = vpop.f32.mrf.mxu1 }
 0x125   :  { %v2687_v40 = vpop.f32.mrf.mxu0 }
 0x126   :  { %v2709_v41 = vpop.f32.mrf.mxu1  ;;  %v2688_v2 = vadd.f32 %v2687_v40, %v2686_v38 }
 0x127   :  { %v2689_v42 = vpop.f32.mrf.mxu0  ;;  %v2710_v11 = vadd.f32 %v2709_v41, %v2708_v39 }
 0x128   :  { %v2711_v43 = vpop.f32.mrf.mxu1  ;;  %v1841_v10 = vadd.f32 %v2688_v2, %v1800_v5 }
 0x129   :  { %v2690_v44 = vpop.f32.mrf.mxu0 }
 0x12a   :  { %v2712_v45 = vpop.f32.mrf.mxu1  ;;  %v2691_v12 = vadd.f32 %v2690_v44, %v2689_v42  ;;  %v1882_v17 = vadd.f32 %v2710_v11, %v1841_v10 }
 0x12b   :  { %v2713_v20 = vadd.f32 %v2712_v45, %v2711_v43 }
 0x12c   :  { %v1844_v18 = vadd.f32 %v2691_v12, %v1803_v14 }
 0x12e   :  { %v1885_v25 = vadd.f32 %v2713_v20, %v1844_v18 }
 0x143   :  { %v2730_v46 = vpop.f32.mrf.mxu0 }
 0x144   :  { %v2752_v49 = vpop.f32.mrf.mxu1 }
 0x145   :  { %v2731_v50 = vpop.f32.mrf.mxu0 }
 0x146   :  { %v2753_v54 = vpop.f32.mrf.mxu1  ;;  %v2732_v15 = vadd.f32 %v2731_v50, %v2730_v46 }
 0x147   :  { %v2733_v56 = vpop.f32.mrf.mxu0  ;;  %v2754_v22 = vadd.f32 %v2753_v54, %v2752_v49 }
 0x148   :  { %v2755_v59 = vpop.f32.mrf.mxu1  ;;  %v1923_v21 = vadd.f32 %v2732_v15, %v1882_v17 }
 0x149   :  { %v2734_v0 = vpop.f32.mrf.mxu0 }
 0x14a   :  { %v2756_v3 = vpop.f32.mrf.mxu1  ;;  %v2735_v23 = vadd.f32 %v2734_v0, %v2733_v56  ;;  %v1964_v28 = vadd.f32 %v2754_v22, %v1923_v21 }
 0x14b   :  { %v2757_v31 = vadd.f32 %v2756_v3, %v2755_v59  ;;  %v3111_v59 = vld [vmem:[%s3960_s5 + $0x10] sm:$0xff]  }
 0x14c   :  { %v1926_v29 = vadd.f32 %v2735_v23, %v1885_v25  ;;  %2895 = vmatpush3.bf16.msra.mxu1 %v3111_v59 }
 0x14d   :  { %2896 = vmatprep.subr.bf16.mxu1 %v3114_v8 }
 0x14e   :  { %v1967_v37 = vadd.f32 %v2757_v31, %v1926_v29 }
 0x150   :  { %2897 = vmatpush3.bf16.msra.mxu1 %v3112_v60 }
 0x151   :  { %2898 = vmatprep.subr.bf16.mxu1 %v3114_v8  ;;  %v2573_v8 = vld [vmem:[%s3963_s6] ss:$0 sm:$0xff] }
 0x154   :  { %2899 = vmatpush3.bf16.msra.mxu1 %v3113_v61 }
 0x163   :  { %v2774_v4 = vpop.f32.mrf.mxu0 }
 0x164   :  { %v2796_v7 = vpop.f32.mrf.mxu1 }
 0x165   :  { %v2775_v13 = vpop.f32.mrf.mxu0 }
 0x166   :  { %v2797_v16 = vpop.f32.mrf.mxu1  ;;  %v2776_v26 = vadd.f32 %v2775_v13, %v2774_v4 }
 0x167   :  { %v2777_v19 = vpop.f32.mrf.mxu0  ;;  %v2798_v33 = vadd.f32 %v2797_v16, %v2796_v7 }
 0x168   :  { %v2799_v24 = vpop.f32.mrf.mxu1  ;;  %v2005_v32 = vadd.f32 %v2776_v26, %v1964_v28 }
 0x169   :  { %v2778_v27 = vpop.f32.mrf.mxu0 }
 0x16a   :  { %v2800_v30 = vpop.f32.mrf.mxu1  ;;  %v2779_v34 = vadd.f32 %v2778_v27, %v2777_v19  ;;  %v2046_v40 = vadd.f32 %v2798_v33, %v2005_v32 }
 0x16b   :  { %v2801_v45 = vadd.f32 %v2800_v30, %v2799_v24 }
 0x16c   :  { %v2008_v41 = vadd.f32 %v2779_v34, %v1967_v37 }
 0x16e   :  { %v2049_v49 = vadd.f32 %v2801_v45, %v2008_v41 }
 0x183   :  { %v2818_v35 = vpop.f32.mrf.mxu0 }
 0x184   :  { %v2840_v36 = vpop.f32.mrf.mxu1 }
 0x185   :  { %v2819_v38 = vpop.f32.mrf.mxu0 }
 0x186   :  { %v2841_v39 = vpop.f32.mrf.mxu1  ;;  %v2820_v42 = vadd.f32 %v2819_v38, %v2818_v35 }
 0x187   :  { %v2821_v43 = vpop.f32.mrf.mxu0  ;;  %v2842_v50 = vadd.f32 %v2841_v39, %v2840_v36 }
 0x188   :  { %v2843_v44 = vpop.f32.mrf.mxu1  ;;  %v2087_v46 = vadd.f32 %v2820_v42, %v2046_v40 }
 0x189   :  { %v2822_v47 = vpop.f32.mrf.mxu0 }
 0x18a   :  { %v2844_v48 = vpop.f32.mrf.mxu1  ;;  %v2823_v51 = vadd.f32 %v2822_v47, %v2821_v43  ;;  %v2128_v52 = vadd.f32 %v2842_v50, %v2087_v46 }
 0x18b   :  { %v2845_v54 = vadd.f32 %v2844_v48, %v2843_v44 }
 0x18c   :  { %v2090_v53 = vadd.f32 %v2823_v51, %v2049_v49  ;;  %v2134_v56 = vmax.f32 %v2128_v52, 0.0 }
 0x18e   :  { %v2131_v55 = vadd.f32 %v2845_v54, %v2090_v53 }
 0x190   :  { %v2135_v57 = vmax.f32 %v2131_v55, 0.0 }
 0x192   :  { %v2136_v58 = vpack.c.bf16 %v2135_v57, %v2134_v56 }
 0x194   :  { %2881 = vmatmul.mubr.bf16.vlgmr.msra.gmra.mxu0 %v2136_v58 }
 0x254   :  { %v2242_v63 = vpop.f32.mrf.mxu0 }
 0x255   :  { %v2243_v1 = vadd.f32 %v2564_v62, %v2242_v63 }
 0x256   :  { %v2882_v0 = vpop.f32.mrf.mxu0 }
 0x257   :  { %v2249_v5 = vmax.f32 %v2243_v1, 0.0 }
 0x258   :  { %v2245_v2 = vpop.f32.mrf.mxu0 }
 0x259   :  { %v2246_v3 = vadd.f32 %v2564_v62, %v2245_v2 }
 0x25a   :  { %v2883_v4 = vpop.f32.mrf.mxu0 }
 0x25b   :  { %v2250_v6 = vmax.f32 %v2246_v3, 0.0 }
 0x25d   :  { %v2251_v7 = vpack.c.bf16 %v2250_v6, %v2249_v5 }
 0x25f   :  { %2901 = vmatmul.mubr.bf16.vlgmr.msra.gmra.mxu1 %v2251_v7 }
 0x31f   :  { %v2357_v9 = vpop.f32.mrf.mxu1 }
 0x320   :  { %v2358_v10 = vadd.f32 %v2573_v8, %v2357_v9 }
 0x321   :  { %v2902_v11 = vpop.f32.mrf.mxu1 }
 0x322   :  { %2365 = vst.msk [vmem:[%s3964_s7] sm:$0xff] %vm2364_vm1, %v2358_v10 }
 0x323   :  { %v2360_v12 = vpop.f32.mrf.mxu1 }
 0x324   :  { %v2361_v13 = vadd.f32 %v2573_v8, %v2360_v12 }
 0x325   :  { %v2903_v14 = vpop.f32.mrf.mxu1 }
 0x326   :  { %2366 = vst.msk [vmem:[%s3964_s7 + $0x8] sm:$0xff] %vm2364_vm1, %v2361_v13 }

</bundles_post_ra>
